<compile_context>
chip_gen: v7x
topology: tpu7x:2x2x1
jax: 0.10.0
libtpu: 0.0.40
codegen_flags: <defaults>
</compile_context>

<pallas_src>
import functools

import jax
import jax.numpy as jnp
from jax.experimental import pallas as pl
from jax.experimental.pallas import tpu as pltpu

_COMPUTE_DTYPE = jnp.bfloat16   # MXU operand dtype (accumulation is f32)
_LRELU_SLOPE = 0.01             # nn.LeakyReLU() default negative_slope


# --------------------------------------------------------------------------- #
# Fused kernel: conv1+BN1+LReLU -> (in-VMEM H reflect) -> conv2+BN2+LReLU
# --------------------------------------------------------------------------- #
def _conv_block_kernel(x_ref, w1_ref, b1_ref, w2_ref, b2_ref, o_ref, *,
                       NB, H, L):
    """One block of NB images, everything lane-dense.

    x_ref:  (NB, H+2, K1p)  bf16, H-reflect-padded input; lanes = (w, cin),
                            zero-padded to a 128 multiple
    w1_ref: (3, K1p, L)     bf16 per-kh conv matrices (BN scale + W reflect folded)
    b1_ref: (1, L)          f32 folded BN bias, tiled over W
    w2_ref: (3, L, L)       bf16 per-kh conv matrices for stage 2
    b2_ref: (1, L)          f32
    o_ref:  (NB, H, L)      lane-dense output, L = W*Cout
    """
    M = NB * H
    x = x_ref[...]                                         # (NB, H+2, K1p) bf16

    # ---- stage 1: 3 per-tap MXU matmuls, batch folded into M ---------------
    acc = jnp.zeros((M, L), jnp.float32)
    for kh in range(3):
        lhs = x[:, kh:kh + H, :].reshape(M, -1)            # (NB*H, K1p)
        acc = acc + jnp.dot(lhs, w1_ref[kh],
                            preferred_element_type=jnp.float32)
    y1 = acc + b1_ref[...]
    # Dropout2d(0.3) is identity in eval mode.
    y1 = jnp.where(y1 > 0, y1, _LRELU_SLOPE * y1)          # (M, L) f32

    # ---- stage 2: only the 2-row H reflect remains (W reflect is in w2m) ---
    y1 = y1.reshape(NB, H, L).astype(_COMPUTE_DTYPE)
    y1p = jnp.concatenate([y1[:, 1:2], y1, y1[:, H - 2:H - 1]], axis=1)
    #                                                       # (NB, H+2, L)
    acc2 = jnp.zeros((M, L), jnp.float32)
    for kh in range(3):
        lhs = y1p[:, kh:kh + H, :].reshape(M, -1)          # (NB*H, L)
        acc2 = acc2 + jnp.dot(lhs, w2_ref[kh],
                              preferred_element_type=jnp.float32)
    y2 = acc2 + b2_ref[...]
    y2 = jnp.where(y2 > 0, y2, _LRELU_SLOPE * y2)

    o_ref[...] = y2.reshape(NB, H, L).astype(o_ref.dtype)


# --------------------------------------------------------------------------- #
# Parameter prep (one-off, plain JAX)
# --------------------------------------------------------------------------- #
def _reflect_index(W):
    """Source column in [0, W) for padded column p in [0, W+2) (reflect, pad=1)."""
    p = jnp.arange(W + 2)
    return jnp.where(p == 0, 1, jnp.where(p == W + 1, W - 2, p - 1))


def _tap_matrices(w_hwio, bn_scale, W, k_pad, dtype):
    """Per-kh conv matrices B (shape (3, k_pad, W*Co)) such that, with the
    H-padded lane-dense input A[r, w*Ci+ci] = x_hpad[r, w, ci],
        y[h, w_out*Co+co] = sum_kh (A[h+kh] @ B[kh])[w_out*Co+co]
    equals conv3x3(reflect-W-pad(x), weight * bn_scale)."""
    kH, kW, Ci, Co = w_hwio.shape
    wf = (w_hwio * bn_scale[None, None, None, :]).astype(jnp.float32)
    src = _reflect_index(W)
    out_idx = jnp.arange(W)
    taps = []
    for kh in range(kH):
        m4 = jnp.zeros((W, Ci, W, Co), jnp.float32)
        for kw in range(kW):
            # output col w_out reads padded col (w_out+kw) -> source col src[...]
            sel = jnp.zeros((W, W), jnp.float32)
            sel = sel.at[src[out_idx + kw], out_idx].add(1.0)
            m4 = m4 + sel[:, None, :, None] * wf[kh, kw][None, :, None, :]
        blk = m4.reshape(W * Ci, W * Co)
        blk = jnp.pad(blk, ((0, k_pad - W * Ci), (0, 0)))   # zero rows for lane pad
        taps.append(blk)
    return jnp.stack(taps, axis=0).astype(dtype)            # (3, k_pad, W*Co)


# --------------------------------------------------------------------------- #
# Wrapper
# --------------------------------------------------------------------------- #
def conv_block_forward(x_nchw, params):
    """Full Conv_Block forward (eval mode). x_nchw: (N, C_in, H, W) like PyTorch.

    params = [(w1, scale1, bias1), (w2, scale2, bias2)] with w in HWIO layout
    (PyTorch OIHW maps via transpose (2, 3, 1, 0)); scale/bias are the folded
    BatchNorm eval-mode affine (gamma/sqrt(var+eps), beta - mean*scale).
    """
    (w1, scale1, bias1), (w2, scale2, bias2) = params
    N, Cin, H, W = x_nchw.shape
    Cout = w1.shape[-1]
    assert H >= 3 and W >= 3, "reflect pad=1 requires spatial dims >= 3"

    L = W * Cout                                    # output lane width
    K1 = W * Cin
    K1p = ((K1 + 127) // 128) * 128                 # 128-aligned input lanes

    # Images per grid step: fold batch into M = NB*H (~256 MXU rows per dot).
    NB = max(1, min(N, max(1, 256 // H)))
    Npad = ((N + NB - 1) // NB) * NB

    # NCHW -> NHWC once at the block boundary (in a full U-Net keep the whole
    # network NHWC/lane-dense and hoist this to the model boundary).
    x = jnp.transpose(x_nchw, (0, 2, 3, 1))
    # Reflect pad H only; the W reflect pad is folded into the conv matrices.
    xp = jnp.pad(x, ((0, 0), (1, 1), (0, 0), (0, 0)), mode="reflect")
    xp = xp.reshape(N, H + 2, K1)
    xp = jnp.pad(xp, ((0, Npad - N), (0, 0), (0, K1p - K1)))
    xp = xp.astype(_COMPUTE_DTYPE)

    # BN-folded, reflect-folded, bf16 per-tap conv matrices + f32 biases.
    w1m = _tap_matrices(w1, scale1, W, K1p, _COMPUTE_DTYPE)   # (3, K1p, L)
    w2m = _tap_matrices(w2, scale2, W, L, _COMPUTE_DTYPE)     # (3, L,   L)
    b1t = jnp.tile(bias1, W).reshape(1, L).astype(jnp.float32)
    b2t = jnp.tile(bias2, W).reshape(1, L).astype(jnp.float32)

    kernel = functools.partial(_conv_block_kernel, NB=NB, H=H, L=L)
    const = pl.Buffered(1)   # grid-invariant operands: single VMEM buffer

    out = pl.pallas_call(
        kernel,
        out_shape=jax.ShapeDtypeStruct((Npad, H, L), x_nchw.dtype),
        grid=(Npad // NB,),
        in_specs=[
            pl.BlockSpec((NB, H + 2, K1p), lambda n: (n, 0, 0)),
            pl.BlockSpec((3, K1p, L), lambda n: (0, 0, 0), pipeline_mode=const),
            pl.BlockSpec((1, L), lambda n: (0, 0), pipeline_mode=const),
            pl.BlockSpec((3, L, L), lambda n: (0, 0, 0), pipeline_mode=const),
            pl.BlockSpec((1, L), lambda n: (0, 0), pipeline_mode=const),
        ],
        out_specs=pl.BlockSpec((NB, H, L), lambda n: (n, 0, 0)),
        compiler_params=pltpu.CompilerParams(
            dimension_semantics=("parallel",)),
    )(xp, w1m, b1t, w2m, b2t)

    # Lane-dense (N, H, W*Cout) -> NHWC -> NCHW.
    out = out[:N].reshape(N, H, W, Cout)
    return jnp.transpose(out, (0, 3, 1, 2))


# TODO(synk): Dropout2d(0.3) training-mode channel masking and BatchNorm2d
# training-mode batch statistics are not implemented (eval/inference semantics).


# ----------------------- pure-JAX reference for validation ----------------- #
def _ref_forward(x_nchw, params):
    """Reference with the same quantization points (bf16 operands, f32 accum)."""
    x = jnp.transpose(x_nchw, (0, 2, 3, 1))
    for (w, scale, bias) in params:
        xp = jnp.pad(x, ((0, 0), (1, 1), (1, 1), (0, 0)), mode="reflect")
        wf = (w * scale[None, None, None, :]).astype(_COMPUTE_DTYPE)
        y = jax.lax.conv_general_dilated(
            xp.astype(_COMPUTE_DTYPE), wf, window_strides=(1, 1),
            padding="VALID", dimension_numbers=("NHWC", "HWIO", "NHWC"),
            preferred_element_type=jnp.float32)
        y = y + bias.reshape(1, 1, 1, -1)
        x = jnp.where(y > 0, y, _LRELU_SLOPE * y)
    return jnp.transpose(x, (0, 3, 1, 2))


def _make_stage_params(key, cin, cout, eps=1e-5):
    k = jax.random.split(key, 5)
    w = jax.random.normal(k[0], (3, 3, cin, cout), jnp.float32) * 0.1   # HWIO
    gamma = jax.random.uniform(k[1], (cout,), jnp.float32, 0.5, 1.5)
    beta = jax.random.normal(k[2], (cout,), jnp.float32) * 0.1
    running_mean = jax.random.normal(k[3], (cout,), jnp.float32) * 0.1
    running_var = jax.random.uniform(k[4], (cout,), jnp.float32, 0.5, 1.5)
    scale = gamma / jnp.sqrt(running_var + eps)
    bias = beta - running_mean * scale
    return (w, scale, bias)


if __name__ == "__main__":
    key = jax.random.PRNGKey(0)
    k_x, k_p1, k_p2 = jax.random.split(key, 3)

    N, C_in, C_out, H, W = 2, 4, 8, 16, 16
    x = jax.random.normal(k_x, (N, C_in, H, W), jnp.float32)   # NCHW like PyTorch

    params = [
        _make_stage_params(k_p1, C_in, C_out),   # conv1 + bn1
        _make_stage_params(k_p2, C_out, C_out),  # conv2 + bn2
    ]

    out = jax.block_until_ready(conv_block_forward(x, params))
    ref = jax.block_until_ready(_ref_forward(x, params))

    assert out.shape == (N, C_out, H, W), out.shape
    err = float(jnp.max(jnp.abs(out - ref)))
    # bf16 dot operands (f32 accumulation): the only quantization mismatch vs.
    # the reference is the reflect-folded boundary weights -> ~1e-3 level.
    assert err < 2e-2, err
    print("KERNEL_OK")
</pallas_src>

<mosaic_0001>
module attributes {stable_mosaic.version = 11 : i64} {
  func.func @_conv_block_kernel(%arg0: i32, %arg1: memref<2x18x128xbf16, #tpu.memory_space<vmem>>, %arg2: memref<3x128x128xbf16, #tpu.memory_space<vmem>>, %arg3: memref<1x128xf32, #tpu.memory_space<vmem>>, %arg4: memref<3x128x128xbf16, #tpu.memory_space<vmem>>, %arg5: memref<1x128xf32, #tpu.memory_space<vmem>>, %arg6: memref<2x16x128xf32, #tpu.memory_space<vmem>>) attributes {dimension_semantics = [#tpu.dimension_semantics<parallel>], iteration_bounds = array<i64: 1>, scalar_prefetch = 0 : i64, scratch_operands = 0 : i64, tpu.core_type = #tpu.core_type<tc>, window_params = [{transform_indices = @transform_0, window_bounds = array<i64: 2, 18, 128>}, {pipeline_mode = #tpu.pipeline_mode<synchronous>, transform_indices = @transform_1, window_bounds = array<i64: 3, 128, 128>}, {pipeline_mode = #tpu.pipeline_mode<synchronous>, transform_indices = @transform_2, window_bounds = array<i64: 1, 128>}, {pipeline_mode = #tpu.pipeline_mode<synchronous>, transform_indices = @transform_3, window_bounds = array<i64: 3, 128, 128>}, {pipeline_mode = #tpu.pipeline_mode<synchronous>, transform_indices = @transform_4, window_bounds = array<i64: 1, 128>}, {transform_indices = @transform_5, window_bounds = array<i64: 2, 16, 128>}]} {
    %c0 = arith.constant 0 : index
    %c0_0 = arith.constant 0 : index
    %c0_1 = arith.constant 0 : index
    %0 = vector.load %arg1[%c0, %c0_0, %c0_1] : memref<2x18x128xbf16, #tpu.memory_space<vmem>>, vector<2x18x128xbf16>
    %cst = arith.constant 0.000000e+00 : f32
    %1 = vector.broadcast %cst : f32 to vector<32x128xf32>
    %2 = vector.extract_strided_slice %0 {offsets = [0, 0, 0], sizes = [2, 16, 128], strides = [1, 1, 1]} : vector<2x18x128xbf16> to vector<2x16x128xbf16>
    %3 = vector.shape_cast %2 : vector<2x16x128xbf16> to vector<32x128xbf16>
    %c0_2 = arith.constant 0 : index
    %c0_3 = arith.constant 0 : index
    %c0_4 = arith.constant 0 : index
    %4 = vector.load %arg2[%c0_2, %c0_3, %c0_4] : memref<3x128x128xbf16, #tpu.memory_space<vmem>>, vector<1x128x128xbf16>
    %5 = vector.shape_cast %4 : vector<1x128x128xbf16> to vector<128x128xbf16>
    %cst_5 = arith.constant dense<0.000000e+00> : vector<32x128xf32>
    %6 = tpu.matmul %3, %5, %cst_5 {dimension_numbers = #tpu.dot_dimension_numbers<[1], [0], [0], [1], [0, 0, 1, 1], [], []>} : vector<32x128xbf16>, vector<128x128xbf16>, vector<32x128xf32> -> vector<32x128xf32>
    %7 = arith.addf %1, %6 : vector<32x128xf32>
    %8 = vector.extract_strided_slice %0 {offsets = [0, 1, 0], sizes = [2, 16, 128], strides = [1, 1, 1]} : vector<2x18x128xbf16> to vector<2x16x128xbf16>
    %9 = vector.shape_cast %8 : vector<2x16x128xbf16> to vector<32x128xbf16>
    %c1 = arith.constant 1 : index
    %c0_6 = arith.constant 0 : index
    %c0_7 = arith.constant 0 : index
    %10 = vector.load %arg2[%c1, %c0_6, %c0_7] : memref<3x128x128xbf16, #tpu.memory_space<vmem>>, vector<1x128x128xbf16>
    %11 = vector.shape_cast %10 : vector<1x128x128xbf16> to vector<128x128xbf16>
    %cst_8 = arith.constant dense<0.000000e+00> : vector<32x128xf32>
    %12 = tpu.matmul %9, %11, %cst_8 {dimension_numbers = #tpu.dot_dimension_numbers<[1], [0], [0], [1], [0, 0, 1, 1], [], []>} : vector<32x128xbf16>, vector<128x128xbf16>, vector<32x128xf32> -> vector<32x128xf32>
    %13 = arith.addf %7, %12 : vector<32x128xf32>
    %14 = vector.extract_strided_slice %0 {offsets = [0, 2, 0], sizes = [2, 16, 128], strides = [1, 1, 1]} : vector<2x18x128xbf16> to vector<2x16x128xbf16>
    %15 = vector.shape_cast %14 : vector<2x16x128xbf16> to vector<32x128xbf16>
    %c2 = arith.constant 2 : index
    %c0_9 = arith.constant 0 : index
    %c0_10 = arith.constant 0 : index
    %16 = vector.load %arg2[%c2, %c0_9, %c0_10] : memref<3x128x128xbf16, #tpu.memory_space<vmem>>, vector<1x128x128xbf16>
    %17 = vector.shape_cast %16 : vector<1x128x128xbf16> to vector<128x128xbf16>
    %cst_11 = arith.constant dense<0.000000e+00> : vector<32x128xf32>
    %18 = tpu.matmul %15, %17, %cst_11 {dimension_numbers = #tpu.dot_dimension_numbers<[1], [0], [0], [1], [0, 0, 1, 1], [], []>} : vector<32x128xbf16>, vector<128x128xbf16>, vector<32x128xf32> -> vector<32x128xf32>
    %19 = arith.addf %13, %18 : vector<32x128xf32>
    %c0_12 = arith.constant 0 : index
    %c0_13 = arith.constant 0 : index
    %20 = vector.load %arg3[%c0_12, %c0_13] : memref<1x128xf32, #tpu.memory_space<vmem>>, vector<1x128xf32>
    %21 = vector.broadcast %20 : vector<1x128xf32> to vector<32x128xf32>
    %22 = arith.addf %19, %21 : vector<32x128xf32>
    %cst_14 = arith.constant 0.000000e+00 : f32
    %23 = vector.broadcast %cst_14 : f32 to vector<32x128xf32>
    %24 = arith.cmpf ogt, %22, %23 : vector<32x128xf32>
    %cst_15 = arith.constant 0.00999999977 : f32
    %25 = vector.broadcast %cst_15 : f32 to vector<32x128xf32>
    %26 = arith.mulf %25, %22 : vector<32x128xf32>
    %27 = arith.select %24, %22, %26 : vector<32x128xi1>, vector<32x128xf32>
    %28 = vector.shape_cast %27 : vector<32x128xf32> to vector<2x16x128xf32>
    %29 = arith.truncf %28 : vector<2x16x128xf32> to vector<2x16x128xbf16>
    %30 = vector.extract_strided_slice %29 {offsets = [0, 1, 0], sizes = [2, 1, 128], strides = [1, 1, 1]} : vector<2x16x128xbf16> to vector<2x1x128xbf16>
    %31 = vector.extract_strided_slice %29 {offsets = [0, 14, 0], sizes = [2, 1, 128], strides = [1, 1, 1]} : vector<2x16x128xbf16> to vector<2x1x128xbf16>
    %32 = tpu.concatenate %30, %29, %31 in 1 : vector<2x1x128xbf16>, vector<2x16x128xbf16>, vector<2x1x128xbf16> -> vector<2x18x128xbf16>
    %cst_16 = arith.constant 0.000000e+00 : f32
    %33 = vector.broadcast %cst_16 : f32 to vector<32x128xf32>
    %34 = vector.extract_strided_slice %32 {offsets = [0, 0, 0], sizes = [2, 16, 128], strides = [1, 1, 1]} : vector<2x18x128xbf16> to vector<2x16x128xbf16>
    %35 = vector.shape_cast %34 : vector<2x16x128xbf16> to vector<32x128xbf16>
    %c0_17 = arith.constant 0 : index
    %c0_18 = arith.constant 0 : index
    %c0_19 = arith.constant 0 : index
    %36 = vector.load %arg4[%c0_17, %c0_18, %c0_19] : memref<3x128x128xbf16, #tpu.memory_space<vmem>>, vector<1x128x128xbf16>
    %37 = vector.shape_cast %36 : vector<1x128x128xbf16> to vector<128x128xbf16>
    %cst_20 = arith.constant dense<0.000000e+00> : vector<32x128xf32>
    %38 = tpu.matmul %35, %37, %cst_20 {dimension_numbers = #tpu.dot_dimension_numbers<[1], [0], [0], [1], [0, 0, 1, 1], [], []>} : vector<32x128xbf16>, vector<128x128xbf16>, vector<32x128xf32> -> vector<32x128xf32>
    %39 = arith.addf %33, %38 : vector<32x128xf32>
    %40 = vector.extract_strided_slice %32 {offsets = [0, 1, 0], sizes = [2, 16, 128], strides = [1, 1, 1]} : vector<2x18x128xbf16> to vector<2x16x128xbf16>
    %41 = vector.shape_cast %40 : vector<2x16x128xbf16> to vector<32x128xbf16>
    %c1_21 = arith.constant 1 : index
    %c0_22 = arith.constant 0 : index
    %c0_23 = arith.constant 0 : index
    %42 = vector.load %arg4[%c1_21, %c0_22, %c0_23] : memref<3x128x128xbf16, #tpu.memory_space<vmem>>, vector<1x128x128xbf16>
    %43 = vector.shape_cast %42 : vector<1x128x128xbf16> to vector<128x128xbf16>
    %cst_24 = arith.constant dense<0.000000e+00> : vector<32x128xf32>
    %44 = tpu.matmul %41, %43, %cst_24 {dimension_numbers = #tpu.dot_dimension_numbers<[1], [0], [0], [1], [0, 0, 1, 1], [], []>} : vector<32x128xbf16>, vector<128x128xbf16>, vector<32x128xf32> -> vector<32x128xf32>
    %45 = arith.addf %39, %44 : vector<32x128xf32>
    %46 = vector.extract_strided_slice %32 {offsets = [0, 2, 0], sizes = [2, 16, 128], strides = [1, 1, 1]} : vector<2x18x128xbf16> to vector<2x16x128xbf16>
    %47 = vector.shape_cast %46 : vector<2x16x128xbf16> to vector<32x128xbf16>
    %c2_25 = arith.constant 2 : index
    %c0_26 = arith.constant 0 : index
    %c0_27 = arith.constant 0 : index
    %48 = vector.load %arg4[%c2_25, %c0_26, %c0_27] : memref<3x128x128xbf16, #tpu.memory_space<vmem>>, vector<1x128x128xbf16>
    %49 = vector.shape_cast %48 : vector<1x128x128xbf16> to vector<128x128xbf16>
    %cst_28 = arith.constant dense<0.000000e+00> : vector<32x128xf32>
    %50 = tpu.matmul %47, %49, %cst_28 {dimension_numbers = #tpu.dot_dimension_numbers<[1], [0], [0], [1], [0, 0, 1, 1], [], []>} : vector<32x128xbf16>, vector<128x128xbf16>, vector<32x128xf32> -> vector<32x128xf32>
    %51 = arith.addf %45, %50 : vector<32x128xf32>
    %c0_29 = arith.constant 0 : index
    %c0_30 = arith.constant 0 : index
    %52 = vector.load %arg5[%c0_29, %c0_30] : memref<1x128xf32, #tpu.memory_space<vmem>>, vector<1x128xf32>
    %53 = vector.broadcast %52 : vector<1x128xf32> to vector<32x128xf32>
    %54 = arith.addf %51, %53 : vector<32x128xf32>
    %cst_31 = arith.constant 0.000000e+00 : f32
    %55 = vector.broadcast %cst_31 : f32 to vector<32x128xf32>
    %56 = arith.cmpf ogt, %54, %55 : vector<32x128xf32>
    %cst_32 = arith.constant 0.00999999977 : f32
    %57 = vector.broadcast %cst_32 : f32 to vector<32x128xf32>
    %58 = arith.mulf %57, %54 : vector<32x128xf32>
    %59 = arith.select %56, %54, %58 : vector<32x128xi1>, vector<32x128xf32>
    %60 = vector.shape_cast %59 : vector<32x128xf32> to vector<2x16x128xf32>
    %c0_33 = arith.constant 0 : index
    %c0_34 = arith.constant 0 : index
    %c0_35 = arith.constant 0 : index
    %61 = vector.load %arg6[%c0_33, %c0_34, %c0_35] : memref<2x16x128xf32, #tpu.memory_space<vmem>>, vector<2x16x128xf32>
    tpu.vector_store %arg6[%c0_33, %c0_34, %c0_35], %60 {strides = array<i32>} : memref<2x16x128xf32, #tpu.memory_space<vmem>>, vector<2x16x128xf32>,
    return
  }
  func.func @transform_0(%arg0: i32) -> (i32, i32, i32) {
    %c0_i32 = arith.constant 0 : i32
    %c0_i32_0 = arith.constant 0 : i32
    %c0_i32_1 = arith.constant 0 : i32
    return %arg0, %c0_i32, %c0_i32_0 : i32, i32, i32
  }
  func.func @transform_1(%arg0: i32) -> (i32, i32, i32) {
    %c0_i32 = arith.constant 0 : i32
    %c0_i32_0 = arith.constant 0 : i32
    %c0_i32_1 = arith.constant 0 : i32
    %c0_i32_2 = arith.constant 0 : i32
    return %c0_i32, %c0_i32_0, %c0_i32_1 : i32, i32, i32
  }
  func.func @transform_2(%arg0: i32) -> (i32, i32) {
    %c0_i32 = arith.constant 0 : i32
    %c0_i32_0 = arith.constant 0 : i32
    %c0_i32_1 = arith.constant 0 : i32
    return %c0_i32, %c0_i32_0 : i32, i32
  }
  func.func @transform_3(%arg0: i32) -> (i32, i32, i32) {
    %c0_i32 = arith.constant 0 : i32
    %c0_i32_0 = arith.constant 0 : i32
    %c0_i32_1 = arith.constant 0 : i32
    %c0_i32_2 = arith.constant 0 : i32
    return %c0_i32, %c0_i32_0, %c0_i32_1 : i32, i32, i32
  }
  func.func @transform_4(%arg0: i32) -> (i32, i32) {
    %c0_i32 = arith.constant 0 : i32
    %c0_i32_0 = arith.constant 0 : i32
    %c0_i32_1 = arith.constant 0 : i32
    return %c0_i32, %c0_i32_0 : i32, i32
  }
  func.func @transform_5(%arg0: i32) -> (i32, i32, i32) {
    %c0_i32 = arith.constant 0 : i32
    %c0_i32_0 = arith.constant 0 : i32
    %c0_i32_1 = arith.constant 0 : i32
    return %arg0, %c0_i32, %c0_i32_0 : i32, i32, i32
  }
}

</mosaic_0001>

<bundles_post_ra>
// kernel: tpu_custom_call.1
= control target key start
LH: loop header
LB: loop body
LE: loop exit
PB: predicated region body
PF: predicated region fallthrough
CT: control target
= control target key end

     0   :  { %10 = vsyncpa [#allocation3], 0  ;;  %s1534_s0 = inlined_call_operand.vmem [shape: bf16[2,18,128], index: 0, kind: input, shape index: {}]   ;;  %s1535_s1 = inlined_call_operand.hbm [shape: bf16[3,128,128], index: 1, kind: input, shape index: {}]   ;;  %s1536_s2 = inlined_call_operand.vmem [shape: f32[1,128], index: 2, kind: input, shape index: {}]   ;;  %s1537_s3 = inlined_call_operand.hbm [shape: bf16[3,128,128], index: 3, kind: input, shape index: {}]   ;;  %s1538_s4 = inlined_call_operand.vmem [shape: f32[1,128], index: 4, kind: input, shape index: {}]   ;;  %s1539_s5 = inlined_call_operand.hbm [shape: f32[2,16,128], index: 5, kind: output, shape index: {}]  }
   0x1   :  { %11 = vsyncpa [#allocation6], 0 }
   0x2   :  { %12 = vsyncpa [#allocation4], 0  ;;  %s1368_s18 = smov [#allocation2]   ;;  %s1296_s22 = scalar_lea.hbm %s1535_s1, 3072 }
   0x3   :  { %s20_s19 = sshll.u32 %s1368_s18, 4  ;;  %p1297_p0 = scmp.ne.s32.totalorder %s1535_s1, %s1296_s22  ;;  %s21_s19 = int_to_ptr.vmem [resolvable:$true] %s20_s19 }
   0x4   :  { %p1300_p1 = scmp.lt.u32.totalorder %s1296_s22, %s1535_s1 }
   0x6   :  { %p1302_p2 = pnand %p1300_p1, %p1297_p0 }
   0x8   :  { %1305 = shalt.err (!%p1302_p2)
}
   0x9   :  { %s1306_s27 = scalar_lea.vmem %s21_s19, 3072  ;;  %p1311_p4 = scmp.lt.s32.totalorder %s21_s19, %s21_s19 }
   0xa   :  { %p1307_p3 = scmp.ne.s32.totalorder %s21_s19, %s1306_s27  ;;  %p1312_p5 = scmp.lt.s32.totalorder %s1306_s27, %s1306_s27 }
   0xc   :  { %p1313_p6 = por %p1312_p5, %p1311_p4 }
   0xe   :  { %p1314_p7 = pnand %p1313_p6, %p1307_p3 }
  0x10   :  { %1317 = shalt.err (!%p1314_p7)
}
  0x11   :  { %s1369_s28 = smov 64   ;;  %s1370_s29 = smov 4  }
  0x12   :  { %26 = dma.hbm_to_vmem [thread:$0]  %s1535_s1, 3072, %s21_s19, [#allocation3], %s1369_s28, %s1369_s28, %s1370_s29  }
  0x13   :  { %s1371_s7 = smov [#allocation5]   ;;  %s1318_s11 = scalar_lea.hbm %s1537_s3, 3072 }
  0x14   :  { %s34_s8 = sshll.u32 %s1371_s7, 4  ;;  %p1319_p8 = scmp.ne.s32.totalorder %s1537_s3, %s1318_s11  ;;  %s35_s8 = int_to_ptr.vmem [resolvable:$true] %s34_s8 }
  0x15   :  { %p1322_p9 = scmp.lt.u32.totalorder %s1318_s11, %s1537_s3 }
  0x17   :  { %p1324_p10 = pnand %p1322_p9, %p1319_p8 }
  0x19   :  { %1327 = shalt.err (!%p1324_p10)
}
  0x1a   :  { %s1328_s16 = scalar_lea.vmem %s35_s8, 3072  ;;  %p1333_p12 = scmp.lt.s32.totalorder %s35_s8, %s35_s8 }
  0x1b   :  { %p1329_p11 = scmp.ne.s32.totalorder %s35_s8, %s1328_s16  ;;  %p1334_p13 = scmp.lt.s32.totalorder %s1328_s16, %s1328_s16 }
  0x1d   :  { %p1335_p0 = por %p1334_p13, %p1333_p12 }
  0x1f   :  { %p1336_p1 = pnand %p1335_p0, %p1329_p11 }
  0x21   :  { %1339 = shalt.err (!%p1336_p1)
}
  0x22   :  { %40 = dma.hbm_to_vmem [thread:$0]  %s1537_s3, 3072, %s35_s8, [#allocation6], %s1369_s28, %s1369_s28, %s1370_s29  }
  0x23   :  { %1362 = dma.done.wait [#allocation3], 3072  }
  0x24   :  { %1363 = vsyncadd [#allocation3], 4294964224 }
  0x25   :  { %1364 = dma.done.wait [#allocation6], 3072  }
  0x26   :  { %1365 = vsyncadd [#allocation6], 4294964224  ;;  %v1246_v0 = vld [vmem:[#allocation2 + $0x40] sm:$0xff]   ;;  %v1247_v1 = vld [vmem:[#allocation2 + $0x48] sm:$0xff]   ;;  %vm72_vm0 = vsmask.f32 3328 }
  0x27   :  { %1103 = vmatprep.subr.bf16.mxu0 %v1246_v0  ;;  %v1248_v2 = vld [vmem:[#allocation2 + $0x50] sm:$0xff]   ;;  %v1249_v3 = vld [vmem:[#allocation2 + $0x58] sm:$0xff]   ;;  %v1432_v4 = vld [vmem:[%s1534_s0] sm:$0xf]  ;;  %vm73_vm1 = vsmask.f32 7440 }
  0x28   :  { %1104 = vmatpush3.bf16.msra.mxu0 %v1246_v0  ;;  %v1437_v5 = vld [vmem:[%s1534_s0 + $0x4] sm:$0xf]  ;;  %v1442_v6 = vld [vmem:[%s1534_s0 + $0x8] sm:$0x1]  ;;  %v76_v7 = vshrl.u32 %v1432_v4, 16  ;;  %v79_v8 = vshll.u32 %v1432_v4, 16  ;;  %vm1464_vm2 = vmor %vm72_vm0, %vm73_vm1 }
  0x29   :  { %1105 = vmatprep.subr.bf16.mxu0 %v1247_v1  ;;  %v85_v9 = vshll.u32 %v1437_v5, 16  ;;  %v89_v10 = vshrl.u32 %v1437_v5, 16  ;;  %v95_v11 = vshll.u32 %v1442_v6, 16  ;;  %v1452_v16 = vld [vmem:[%s1534_s0 + $0xc] sm:$0xf]  ;;  %v1250_v17 = vld [vmem:[#allocation2 + $0x60] sm:$0xff]   ;;  %v995_v60 = vcombine.low %v1432_v4, %v1437_v5 }
  0x2a   :  { %v78_v12 = vrot.slane %v76_v7, 4  ;;  %v81_v13 = vrot.slane %v79_v8, 5  ;;  %v1457_v19 = vld [vmem:[%s1534_s0 + $0x10] sm:$0xf]  ;;  %v100_v20 = vshrl.u32 %v1452_v16, 16  ;;  %v103_v23 = vshll.u32 %v1452_v16, 16 }
  0x2b   :  { %v87_v14 = vrot.slane %v85_v9, 5  ;;  %v91_v15 = vrot.slane %v89_v10, 4  ;;  %v97_v18 = vrot.slane %v95_v11, 5  ;;  %v109_v24 = vshll.u32 %v1457_v19, 16  ;;  %v55_v26 = vld [vmem:[%s1534_s0 + $0x14] sm:$0x1] }
  0x2c   :  { %1106 = vmatpush3.bf16.msra.mxu0 %v1247_v1  ;;  %v82_v21 = vor.u32 %v81_v13, %v78_v12  ;;  %v102_v27 = vrot.slane %v100_v20, 4  ;;  %v113_v28 = vshrl.u32 %v1457_v19, 16  ;;  %v105_v31 = vrot.slane %v103_v23, 5  ;;  %v1251_v33 = vld [vmem:[#allocation2 + $0x68] sm:$0xff]   ;;  %v1252_v41 = vld [vmem:[#allocation2 + $0x70] sm:$0xff]   ;;  %v1253_v42 = vld [vmem:[#allocation2 + $0x78] sm:$0xff]  }
  0x2d   :  { %1107 = vmatprep.subr.bf16.mxu0 %v1248_v2  ;;  %v92_v22 = vor.u32 %v91_v15, %v87_v14  ;;  %v111_v32 = vrot.slane %v109_v24, 5  ;;  %v119_v38 = vshll.u32 %v55_v26, 16  ;;  %vm356_vm3 = vcmask 1042432   ;;  %v1254_v54 = vld [vmem:[#allocation2] sm:$0xff]   ;;  %v1255_v58 = vld [vmem:[#allocation2 + $0x8] sm:$0xff]   ;;  %v1256_v62 = vld [vmem:[#allocation2 + $0x10] sm:$0xff]  }
  0x2e   :  { %v83_v29 = vrot.slane %v82_v21, 4  ;;  %v115_v34 = vrot.slane %v113_v28, 4  ;;  %v106_v39 = vor.u32 %v105_v31, %v102_v27  ;;  %vm357_vm4 = vcmask 1046532   ;;  %v1272_v59 = vld [vmem:[#allocation5 + $0x40] sm:$0xff]   ;;  %v1273_v61 = vld [vmem:[#allocation5 + $0x48] sm:$0xff]   ;;  %v1257_v63 = vld [vmem:[#allocation2 + $0x18] sm:$0xff]  }
  0x2f   :  { %v93_v30 = vrot.slane %v92_v22, 4  ;;  %v121_v43 = vrot.slane %v119_v38, 5  ;;  %v1006_v44 = vrot.slane %v1452_v16, 9  ;;  %vm1477_vm5 = vmor %vm356_vm3, %vm357_vm4  ;;  %v371_v48 = vrot.slane %v55_v26, 5  ;;  %1163 = vmatprep.subr.bf16.mxu1 %v1272_v59  ;;  %v1258_v0 = vld [vmem:[#allocation2 + $0x20] sm:$0xff]   ;;  %v1259_v1 = vld [vmem:[#allocation2 + $0x28] sm:$0xff]  }
  0x30   :  { %1108 = vmatpush3.bf16.msra.mxu0 %v1248_v2  ;;  %v88_v35 = vsel %vm1464_vm2, %v83_v29, %v87_v14  ;;  %v116_v40 = vor.u32 %v115_v34, %v111_v32  ;;  %v107_v45 = vrot.slane %v106_v39, 4  ;;  %v368_v49 = vrot.slane %v1457_v19, 5  ;;  %1164 = vmatpush3.bf16.msra.mxu1 %v1272_v59  ;;  %v1260_v2 = vld [vmem:[#allocation2 + $0x30] sm:$0xff]   ;;  %v1261_v8 = vld [vmem:[#allocation2 + $0x38] sm:$0xff]   ;;  %v1263_v11 = vld [vmem:[#allocation2 + $0x80] sm:$0xff]   ;;  %s1372_s6 = smov [#allocation7]  }
  0x31   :  { %1109 = vmatprep.subr.bf16.mxu0 %v1249_v3  ;;  %v98_v36 = vsel %vm1464_vm2, %v93_v30, %v97_v18  ;;  %1165 = vmatprep.subr.bf16.mxu1 %v1273_v61  ;;  %v364_v7 = vrot.slane %v1442_v6, 5  ;;  %v1005_v9 = vrot.slane %v1432_v4, 9  ;;  %v1265_v6 = vld [vmem:[#allocation2 + $0x88] sm:$0xff]   ;;  %v1266_v4 = vld [vmem:[#allocation2 + $0x90] sm:$0xff]   ;;  %v1267_v15 = vld [vmem:[#allocation2 + $0x98] sm:$0xff]   ;;  %vm548_vm10 = vcmask 1040384  }
  0x32   :  { %v985_v37 = vcombine.low %v88_v35, %v98_v36  ;;  %v117_v46 = vrot.slane %v116_v40, 4  ;;  %v1484_v50 = vsel %vm1477_vm5, %v1006_v44, %v368_v49  ;;  %v370_v51 = vrot.slane %v368_v49, 4  ;;  %v1269_v18 = vld [vmem:[#allocation2 + $0xa8] sm:$0xff]   ;;  %v1274_v20 = vld [vmem:[#allocation5 + $0x50] sm:$0xff]   ;;  %v1275_v21 = vld [vmem:[#allocation5 + $0x58] sm:$0xff]   ;;  %s972_s7 = sshll.u32 %s1372_s6, 4  ;;  %s973_s7 = int_to_ptr.vmem [resolvable:$true] %s972_s7 }
  0x33   :  { %v112_v52 = vsel %vm1464_vm2, %v107_v45, %v111_v32  ;;  %v1276_v22 = vld [vmem:[#allocation5 + $0x60] sm:$0xff]   ;;  %v1277_v23 = vld [vmem:[#allocation5 + $0x68] sm:$0xff]   ;;  %v1278_v24 = vld [vmem:[#allocation5 + $0x70] sm:$0xff]   ;;  %vm549_vm11 = vsmask.f32 256  ;;  %vm813_vm13 = vcmask 1046528   ;;  %p1345_p3 = scmp.lt.s32.totalorder %s973_s7, %s973_s7 }
  0x34   :  { %1110 = vmatpush3.bf16.msra.mxu0 %v1249_v3  ;;  %1119 = vmatprep.mubr.bf16.mxu0 %v985_v37  ;;  %v122_v53 = vsel %vm1464_vm2, %v117_v46, %v121_v43  ;;  %v1492_v55 = vsel %vm1477_vm5, %v370_v51, %v371_v48  ;;  %v361_v3 = vrot.slane %v1437_v5, 5  ;;  %v996_v5 = vcombine.low %v1452_v16, %v1457_v19  ;;  %v1270_v16 = vld [vmem:[#allocation2 + $0xb0] sm:$0xff]   ;;  %v1271_v19 = vld [vmem:[#allocation2 + $0xb8] sm:$0xff]   ;;  %v1510_v26 = vld [vmem:[#allocation5] sm:$0xff]  }
  0x35   :  { %1111 = vmatprep.subr.bf16.mxu0 %v1250_v17  ;;  %v1008_v56 = vcombine.low %v1484_v50, %v1492_v55  ;;  %v986_v57 = vcombine.low %v112_v52, %v122_v53  ;;  %1166 = vmatpush3.bf16.msra.mxu1 %v1273_v61  ;;  %v1279_v25 = vld [vmem:[#allocation5 + $0x78] sm:$0xff]   ;;  %v1017_v27 = vld [vmem:[%s1536_s2] ss:$0 sm:$0xff]  ;;  %vm550_vm12 = vmand %vm548_vm10, %vm549_vm11  ;;  %vm571_vm14 = vsmask.f32 7424 }
  0x36   :  { %v363_v10 = vrot.slane %v361_v3, 4  ;;  %v362_v12 = vsel %vm1477_vm5, %v1005_v9, %v361_v3  ;;  %1167 = vmatprep.subr.bf16.mxu1 %v1274_v20 }
  0x38   :  { %1112 = vmatpush3.bf16.msra.mxu0 %v1250_v17  ;;  %v365_v13 = vsel %vm1477_vm5, %v363_v10, %v364_v7  ;;  %v1268_v17 = vld [vmem:[#allocation2 + $0xa0] sm:$0xff]  }
  0x39   :  { %1113 = vmatprep.subr.bf16.mxu0 %v1251_v33  ;;  %v1007_v14 = vcombine.low %v362_v12, %v365_v13  ;;  %1168 = vmatpush3.bf16.msra.mxu1 %v1274_v20  ;;  %v1288_v20 = vld [vmem:[#allocation5 + $0x80] sm:$0xff]  }
  0x3a   :  { %1169 = vmatprep.subr.bf16.mxu1 %v1275_v21 }
  0x3c   :  { %1114 = vmatpush3.bf16.msra.mxu0 %v1251_v33 }
  0x3d   :  { %1115 = vmatprep.subr.bf16.mxu0 %v1252_v41  ;;  %1170 = vmatpush3.bf16.msra.mxu1 %v1275_v21 }
  0x3e   :  { %1171 = vmatprep.subr.bf16.mxu1 %v1276_v22 }
  0x40   :  { %1116 = vmatpush3.bf16.msra.mxu0 %v1252_v41 }
  0x41   :  { %1117 = vmatprep.subr.bf16.mxu0 %v1253_v42  ;;  %1172 = vmatpush3.bf16.msra.mxu1 %v1276_v22 }
  0x42   :  { %1173 = vmatprep.subr.bf16.mxu1 %v1277_v23 }
  0x44   :  { %1118 = vmatpush3.bf16.msra.mxu0 %v1253_v42 }
  0x45   :  { %1123 = vmatprep.subr.bf16.mxu0 %v1254_v54  ;;  %1174 = vmatpush3.bf16.msra.mxu1 %v1277_v23  ;;  %v1289_v23 = vld [vmem:[#allocation5 + $0x88] sm:$0xff]  }
  0x46   :  { %1175 = vmatprep.subr.bf16.mxu1 %v1278_v24 }
  0x47   :  { %1120 = vmatmul.mubr.bf16.vlgmr.msra.gmra.mrb[0].mxu0 %v986_v57 }
  0x48   :  { %1124 = vmatpush3.bf16.msra.mxu0 %v1254_v54  ;;  %1139 = vmatprep.mubr.bf16.mxu0 %v995_v60 }
  0x49   :  { %1125 = vmatprep.subr.bf16.mxu0 %v1255_v58  ;;  %1176 = vmatpush3.bf16.msra.mxu1 %v1278_v24 }
  0x4a   :  { %1177 = vmatprep.subr.bf16.mxu1 %v1279_v25 }
  0x4c   :  { %1126 = vmatpush3.bf16.msra.mxu0 %v1255_v58 }
  0x4d   :  { %1127 = vmatprep.subr.bf16.mxu0 %v1256_v62  ;;  %1178 = vmatpush3.bf16.msra.mxu1 %v1279_v25  ;;  %v1290_v25 = vld [vmem:[#allocation5 + $0x90] sm:$0xff]  }
  0x4e   :  { %1183 = vmatprep.subr.bf16.mxu1 %v1510_v26 }
  0x50   :  { %1128 = vmatpush3.bf16.msra.mxu0 %v1256_v62 }
  0x51   :  { %1129 = vmatprep.subr.bf16.mxu0 %v1257_v63 }
  0x54   :  { %1130 = vmatpush3.bf16.msra.mxu0 %v1257_v63 }
  0x55   :  { %1131 = vmatprep.subr.bf16.mxu0 %v1258_v0 }
  0x58   :  { %1132 = vmatpush3.bf16.msra.mxu0 %v1258_v0 }
  0x59   :  { %1133 = vmatprep.subr.bf16.mxu0 %v1259_v1 }
  0x5c   :  { %1134 = vmatpush3.bf16.msra.mxu0 %v1259_v1 }
  0x5d   :  { %1135 = vmatprep.subr.bf16.mxu0 %v1260_v2 }
  0x60   :  { %1136 = vmatpush3.bf16.msra.mxu0 %v1260_v2 }
  0x61   :  { %1137 = vmatprep.subr.bf16.mxu0 %v1261_v8 }
  0x64   :  { %1138 = vmatpush3.bf16.msra.mxu0 %v1261_v8 }
  0x65   :  { %1143 = vmatprep.subr.bf16.mxu0 %v1263_v11 }
  0x67   :  { %1140 = vmatmul.mubr.bf16.vlgmr.msra.gmra.mrb[0].mxu0 %v996_v5 }
  0x68   :  { %1144 = vmatpush3.bf16.msra.mxu0 %v1263_v11  ;;  %1159 = vmatprep.mubr.bf16.mxu0 %v1007_v14  ;;  %v1281_v14 = vld [vmem:[#allocation5 + $0x8] sm:$0xff]  }
  0x69   :  { %1145 = vmatprep.subr.bf16.mxu0 %v1265_v6 }
  0x6c   :  { %1146 = vmatpush3.bf16.msra.mxu0 %v1265_v6 }
  0x6d   :  { %1147 = vmatprep.subr.bf16.mxu0 %v1266_v4 }
  0x70   :  { %1148 = vmatpush3.bf16.msra.mxu0 %v1266_v4  ;;  %v1282_v4 = vld [vmem:[#allocation5 + $0x10] sm:$0xff]  }
  0x71   :  { %1149 = vmatprep.subr.bf16.mxu0 %v1267_v15 }
  0x74   :  { %1150 = vmatpush3.bf16.msra.mxu0 %v1267_v15  ;;  %v1283_v15 = vld [vmem:[#allocation5 + $0x18] sm:$0xff]  }
  0x75   :  { %1151 = vmatprep.subr.bf16.mxu0 %v1268_v17 }
  0x78   :  { %1152 = vmatpush3.bf16.msra.mxu0 %v1268_v17  ;;  %v1284_v17 = vld [vmem:[#allocation5 + $0x20] sm:$0xff]  }
  0x79   :  { %1153 = vmatprep.subr.bf16.mxu0 %v1269_v18 }
  0x7c   :  { %1154 = vmatpush3.bf16.msra.mxu0 %v1269_v18  ;;  %v1285_v18 = vld [vmem:[#allocation5 + $0x28] sm:$0xff]  }
  0x7d   :  { %1155 = vmatprep.subr.bf16.mxu0 %v1270_v16 }
  0x80   :  { %1156 = vmatpush3.bf16.msra.mxu0 %v1270_v16  ;;  %v1286_v16 = vld [vmem:[#allocation5 + $0x30] sm:$0xff]  }
  0x81   :  { %1157 = vmatprep.subr.bf16.mxu0 %v1271_v19 }
  0x84   :  { %1158 = vmatpush3.bf16.msra.mxu0 %v1271_v19  ;;  %v1287_v19 = vld [vmem:[#allocation5 + $0x38] sm:$0xff]  }
  0x87   :  { %1160 = vmatmul.mubr.bf16.vlgmr.msra.gmra.mrb[0].mxu0 %v1008_v56 }
 0x15a   :  { %v1161_v28 = vpop.f32.mrb[0].mxu0 }
 0x15b   :  { %v508_v29 = vadd.f32 %v1161_v28, %v1017_v27  ;;  %v480_v30 = vpop.f32.mrb[1].mxu0  ;;  %v1293_v28 = vld [vmem:[#allocation5 + $0xa8] sm:$0xff]  }
 0x15c   :  { %v506_v31 = vadd.f32 %v1017_v27, %v480_v30  ;;  %v1162_v32 = vpop.f32.mrb[2].mxu0  ;;  %v1295_v30 = vld [vmem:[#allocation5 + $0xb8] sm:$0xff]  }
 0x15d   :  { %v516_v33 = vmul.f32 0.01, %v508_v29  ;;  %v509_v34 = vadd.f32 %v1162_v32, %v1017_v27  ;;  %v483_v35 = vpop.f32.mrb[3].mxu0  ;;  %vm512_vm6 = vcmp.gt.f32.partialorder %v508_v29, 0.0 }
 0x15e   :  { %v514_v36 = vmul.f32 0.01, %v506_v31  ;;  %v507_v37 = vadd.f32 %v1017_v27, %v483_v35  ;;  %vm510_vm7 = vcmp.gt.f32.partialorder %v506_v31, 0.0  ;;  %v1292_v27 = vld [vmem:[#allocation5 + $0xa0] sm:$0xff]  }
 0x15f   :  { %vm513_vm8 = vcmp.gt.f32.partialorder %v509_v34, 0.0  ;;  %v517_v38 = vmul.f32 0.01, %v509_v34  ;;  %v520_v40 = vsel %vm512_vm6, %v508_v29, %v516_v33  ;;  %v1294_v29 = vld [vmem:[#allocation5 + $0xb0] sm:$0xff]  }
 0x160   :  { %vm511_vm9 = vcmp.gt.f32.partialorder %v507_v37, 0.0  ;;  %v515_v39 = vmul.f32 0.01, %v507_v37  ;;  %v518_v42 = vsel %vm510_vm7, %v506_v31, %v514_v36  ;;  %v1042_v31 = vld [vmem:[%s1538_s4] ss:$0 sm:$0xff]  ;;  %s1340_s4 = scalar_lea.vmem %s973_s7, 512 }
 0x161   :  { %v521_v41 = vsel %vm513_vm8, %v509_v34, %v517_v38  ;;  %p1341_p2 = scmp.ne.s32.totalorder %s973_s7, %s1340_s4  ;;  %p1346_p4 = scmp.lt.s32.totalorder %s1340_s4, %s1340_s4 }
 0x162   :  { %v523_v43 = vpack.c.bf16 %v521_v41, %v520_v40  ;;  %v519_v44 = vsel %vm511_vm9, %v507_v37, %v515_v39 }
 0x163   :  { %v522_v45 = vpack.c.bf16 %v519_v44, %v518_v42  ;;  %p1347_p5 = por %p1346_p4, %p1345_p3 }
 0x164   :  { %v528_v46 = vshrl.u32 %v523_v43, 16  ;;  %v537_v47 = vshll.u32 %v523_v43, 16 }
 0x165   :  { %v525_v48 = vshrl.u32 %v522_v45, 16  ;;  %v533_v49 = vshll.u32 %v522_v45, 16  ;;  %p1348_p6 = pnand %p1347_p5, %p1341_p2 }
 0x166   :  { %v536_v50 = vrot.slane %v528_v46, 7  ;;  %v545_v51 = vrot.slane %v537_v47, 7 }
 0x167   :  { %v532_v52 = vrot.slane %v525_v48, 7  ;;  %v544_v53 = vrot.slane %v533_v49, 7 }
 0x168   :  { %v539_v54 = vor.u32 %v537_v47, %v536_v50  ;;  %v554_v57 = vsel %vm550_vm12, %v536_v50, %v545_v51 }
 0x169   :  { %v535_v55 = vor.u32 %v533_v49, %v532_v52  ;;  %v553_v56 = vsel %vm550_vm12, %v532_v52, %v544_v53  ;;  %v592_v63 = vshll.u32 %v554_v57, 16  ;;  %v818_v3 = vrot.slane %v554_v57, 1 }
 0x16a   :  { %v552_v58 = vsel %vm550_vm12, %v528_v46, %v539_v54  ;;  %v580_v62 = vshll.u32 %v553_v56, 16  ;;  %v815_v22 = vrot.slane %v553_v56, 1 }
 0x16b   :  { %v551_v59 = vsel %vm550_vm12, %v525_v48, %v535_v55  ;;  %v587_v60 = vshll.u32 %v552_v58, 16  ;;  %v585_v0 = vshrl.u32 %v552_v58, 16  ;;  %v817_v2 = vrot.slane %v552_v58, 1 }
 0x16c   :  { %v575_v61 = vshll.u32 %v551_v59, 16  ;;  %v573_v7 = vshrl.u32 %v551_v59, 16  ;;  %v582_v12 = vrot.slane %v580_v62, 1  ;;  %v594_v13 = vrot.slane %v592_v63, 1 }
 0x16d   :  { %v589_v1 = vrot.slane %v587_v60, 1  ;;  %v819_v10 = vsel %vm813_vm13, %v817_v2, %v818_v3  ;;  %v814_v21 = vrot.slane %v551_v59, 1 }
 0x16e   :  { %v577_v8 = vrot.slane %v575_v61, 1 }
 0x16f   :  { %v590_v9 = vor.u32 %v589_v1, %v585_v0  ;;  %v816_v24 = vsel %vm813_vm13, %v814_v21, %v815_v22 }
 0x170   :  { %v578_v11 = vor.u32 %v577_v8, %v573_v7 }
 0x171   :  { %v595_v6 = vsel %vm571_vm14, %v590_v9, %v594_v13 }
 0x172   :  { %v583_v5 = vsel %vm571_vm14, %v578_v11, %v582_v12 }
 0x173   :  { %1179 = vmatprep.mubr.bf16.mxu1 %v583_v5 }
 0x174   :  { %1180 = vmatmul.mubr.bf16.vlgmr.msra.gmra.mrb[0].mxu1 %v595_v6 }
 0x175   :  { %1184 = vmatpush3.bf16.msra.mxu1 %v1510_v26  ;;  %1199 = vmatprep.mubr.bf16.mxu1 %v551_v59  ;;  %v1291_v26 = vld [vmem:[#allocation5 + $0x98] sm:$0xff]  }
 0x176   :  { %1185 = vmatprep.subr.bf16.mxu1 %v1281_v14 }
 0x179   :  { %1186 = vmatpush3.bf16.msra.mxu1 %v1281_v14 }
 0x17a   :  { %1187 = vmatprep.subr.bf16.mxu1 %v1282_v4 }
 0x17d   :  { %1188 = vmatpush3.bf16.msra.mxu1 %v1282_v4 }
 0x17e   :  { %1189 = vmatprep.subr.bf16.mxu1 %v1283_v15 }
 0x181   :  { %1190 = vmatpush3.bf16.msra.mxu1 %v1283_v15 }
 0x182   :  { %1191 = vmatprep.subr.bf16.mxu1 %v1284_v17 }
 0x185   :  { %1192 = vmatpush3.bf16.msra.mxu1 %v1284_v17 }
 0x186   :  { %1193 = vmatprep.subr.bf16.mxu1 %v1285_v18 }
 0x189   :  { %1194 = vmatpush3.bf16.msra.mxu1 %v1285_v18 }
 0x18a   :  { %1195 = vmatprep.subr.bf16.mxu1 %v1286_v16 }
 0x18d   :  { %1196 = vmatpush3.bf16.msra.mxu1 %v1286_v16 }
 0x18e   :  { %1197 = vmatprep.subr.bf16.mxu1 %v1287_v19 }
 0x191   :  { %1198 = vmatpush3.bf16.msra.mxu1 %v1287_v19 }
 0x192   :  { %1203 = vmatprep.subr.bf16.mxu1 %v1288_v20 }
 0x194   :  { %1200 = vmatmul.mubr.bf16.vlgmr.msra.gmra.mrb[0].mxu1 %v552_v58 }
 0x195   :  { %1204 = vmatpush3.bf16.msra.mxu1 %v1288_v20  ;;  %1219 = vmatprep.mubr.bf16.mxu1 %v816_v24 }
 0x196   :  { %1205 = vmatprep.subr.bf16.mxu1 %v1289_v23 }
 0x199   :  { %1206 = vmatpush3.bf16.msra.mxu1 %v1289_v23 }
 0x19a   :  { %1207 = vmatprep.subr.bf16.mxu1 %v1290_v25 }
 0x19d   :  { %1208 = vmatpush3.bf16.msra.mxu1 %v1290_v25 }
 0x19e   :  { %1209 = vmatprep.subr.bf16.mxu1 %v1291_v26 }
 0x1a1   :  { %1210 = vmatpush3.bf16.msra.mxu1 %v1291_v26 }
 0x1a2   :  { %1211 = vmatprep.subr.bf16.mxu1 %v1292_v27 }
 0x1a5   :  { %1212 = vmatpush3.bf16.msra.mxu1 %v1292_v27 }
 0x1a6   :  { %1213 = vmatprep.subr.bf16.mxu1 %v1293_v28 }
 0x1a9   :  { %1214 = vmatpush3.bf16.msra.mxu1 %v1293_v28 }
 0x1aa   :  { %1215 = vmatprep.subr.bf16.mxu1 %v1294_v29 }
 0x1ad   :  { %1216 = vmatpush3.bf16.msra.mxu1 %v1294_v29 }
 0x1ae   :  { %1217 = vmatprep.subr.bf16.mxu1 %v1295_v30 }
 0x1b1   :  { %1218 = vmatpush3.bf16.msra.mxu1 %v1295_v30 }
 0x1b4   :  { %1220 = vmatmul.mubr.bf16.vlgmr.msra.gmra.mrb[0].mxu1 %v819_v10 }
 0x287   :  { %v1221_v32 = vpop.f32.mrb[0].mxu1 }
 0x288   :  { %v949_v33 = vadd.f32 %v1221_v32, %v1042_v31  ;;  %v921_v34 = vpop.f32.mrb[1].mxu1 }
 0x289   :  { %v947_v35 = vadd.f32 %v1042_v31, %v921_v34  ;;  %v1222_v36 = vpop.f32.mrb[2].mxu1 }
 0x28a   :  { %vm953_vm15 = vcmp.gt.f32.partialorder %v949_v33, 0.0  ;;  %v957_v37 = vmul.f32 0.01, %v949_v33  ;;  %v950_v38 = vadd.f32 %v1222_v36, %v1042_v31  ;;  %v924_v39 = vpop.f32.mrb[3].mxu1 }
 0x28b   :  { %vm951_vm0 = vcmp.gt.f32.partialorder %v947_v35, 0.0  ;;  %v955_v40 = vmul.f32 0.01, %v947_v35  ;;  %v948_v41 = vadd.f32 %v1042_v31, %v924_v39 }
 0x28c   :  { %v961_v42 = vsel %vm953_vm15, %v949_v33, %v957_v37  ;;  %vm954_vm1 = vcmp.gt.f32.partialorder %v950_v38, 0.0  ;;  %v958_v43 = vmul.f32 0.01, %v950_v38 }
 0x28d   :  { %965 = vst [vmem:[#allocation7 + $0x10] sm:$0xff] %v961_v42  ;;  %v959_v44 = vsel %vm951_vm0, %v947_v35, %v955_v40  ;;  %vm952_vm2 = vcmp.gt.f32.partialorder %v948_v41, 0.0  ;;  %v956_v45 = vmul.f32 0.01, %v948_v41 }
 0x28e   :  { %963 = vst [vmem:[#allocation7] sm:$0xff] %v959_v44  ;;  %v962_v46 = vsel %vm954_vm1, %v950_v38, %v958_v43 }
 0x28f   :  { %966 = vst [vmem:[#allocation7 + $0x18] sm:$0xff] %v962_v46  ;;  %v960_v47 = vsel %vm952_vm2, %v948_v41, %v956_v45 }
 0x290   :  { %964 = vst [vmem:[#allocation7 + $0x8] sm:$0xff] %v960_v47 }
 0x291   :  { %1351 = shalt.err (!%p1348_p6)
}
 0x292   :  { %s1352_s10 = scalar_lea.hbm %s1539_s5, 512 }
 0x293   :  { %p1353_p7 = scmp.ne.s32.totalorder %s1539_s5, %s1352_s10  ;;  %p1356_p8 = scmp.lt.u32.totalorder %s1352_s10, %s1539_s5 }
 0x295   :  { %p1358_p9 = pnand %p1356_p8, %p1353_p7 }
 0x297   :  { %1361 = shalt.err (!%p1358_p9)
}
 0x298   :  { %s1373_s15 = smov 128   ;;  %s1374_s16 = smov 8  }
 0x299   :  { %978 = dma.vmem_to_hbm [thread:$0]  %s973_s7, 512, %s1539_s5, [#allocation4], %s1373_s15, %s1373_s15, %s1374_s16  }
 0x29a   :  { %1366 = dma.done.wait [#allocation4], 512  }
 0x29b   :  { %1367 = vsyncadd [#allocation4], 4294966784 }
 0x29c   :  { %982 = vsyncpa [#allocation3], 1 }
 0x29d   :  { %983 = vsyncpa [#allocation6], 1 }
 0x29e   :  { %984 = vsyncpa [#allocation4], 1 }

</bundles_post_ra>
